<compile_context>
chip_gen: v7x
topology: tpu7x:2x2x1
jax: 0.10.0
libtpu: 0.0.40
codegen_flags: <defaults>
</compile_context>

<pallas_src>
import functools

import jax
import jax.numpy as jnp
from jax.experimental import pallas as pl
from jax.experimental.pallas import tpu as pltpu


def _prelu(v, alpha):
    return jnp.where(v > 0, v, alpha * v)


def _round_up(n, m):
    return ((n + m - 1) // m) * m


def _cdiv(a, b):
    return -(-a // b)


# ---- shared math (used verbatim by the kernel and the mirror reference) ----

def _extractor_stage(x, w_bf16, b, alpha, act_dtype):
    """Conv1d(k=1)/Linear + PReLU: bf16 MXU operands, f32 accumulation,
    bias + PReLU in act_dtype (bf16 on v6e/v7x, f32 on v5e)."""
    r = jnp.dot(x.astype(jnp.bfloat16), w_bf16,
                preferred_element_type=jnp.float32)
    r = r.astype(act_dtype) + b.astype(act_dtype)
    return _prelu(r, alpha.astype(act_dtype))


def _attention_logits(h, aw1, ab1, aw2_row, ab2):
    """tanh(h @ W1 + b1) @ w2 + b2; the K=1 projection is a VPU
    broadcast-multiply + lane reduce.  Kept f32 (review correctness note)."""
    a = jnp.tanh(jnp.dot(h.astype(aw1.dtype), aw1,
                         preferred_element_type=jnp.float32) + ab1)
    return jnp.sum(a * aw2_row, axis=-1, keepdims=True) + ab2


def _tail(x2, x_clinical, p):
    """N-independent tail (runs once, in the wrapper, in f32):
    clinical path + concat(0.1*x2, 0.9*clin) + classifier + sigmoid."""
    xc = x_clinical.astype(jnp.float32)
    c = jnp.maximum(xc @ p["cw1"] + p["cb1"], 0.0) @ p["cw2"] + p["cb2"]
    cat = jnp.concatenate([x2 * 0.1, c * 0.9], axis=1)
    a = p["alphas"]
    z = _prelu(cat @ p["k1w"] + p["k1b"], a[3])
    z = _prelu(z @ p["k2w"] + p["k2b"], a[4])
    return jax.nn.sigmoid(z @ p["k3w"] + p["k3b"])


# ---- the Pallas kernel -------------------------------------------------------

def _make_kernel(tile_n, n_valid, act_dtype):
    f32 = jnp.float32

    def kernel(x_ref,
               c1w_ref, c1b_ref, c2w_ref, c2b_ref, fcw_ref, fcb_ref,
               aw1_ref, ab1_ref, aw2r_ref, ab2_ref, alphas_ref,
               logit_ref, m_out_ref, l_out_ref, acc_out_ref,
               m_sc, l_sc, acc_sc):
        i = pl.program_id(1)                                   # tile within core
        blk = pl.program_id(0) * pl.num_programs(1) + i        # global tile idx

        @pl.when(i == 0)
        def _init():
            m_sc[...] = jnp.full_like(m_sc, -1e30)
            l_sc[...] = jnp.zeros_like(l_sc)
            acc_sc[...] = jnp.zeros_like(acc_sc)

        # -- per-instance extractor on the streamed tile (cast to bf16 here) --
        h = _extractor_stage(x_ref[...], c1w_ref[...], c1b_ref[...],
                             alphas_ref[0], act_dtype)
        h = _extractor_stage(h, c2w_ref[...], c2b_ref[...],
                             alphas_ref[1], act_dtype)
        h = _extractor_stage(h, fcw_ref[...], fcb_ref[...],
                             alphas_ref[2], act_dtype)          # (TN, fc1)

        # Zero rows that come from ragged / out-of-range tile reads (x is not
        # padded in HBM, so those rows hold undefined data).
        row = jax.lax.broadcasted_iota(jnp.int32, (tile_n, 1), 0) + blk * tile_n
        valid = row < n_valid
        h = jnp.where(valid, h, 0.0)

        # -- attention logits (f32); raw column handed to the wrapper ---------
        logits = _attention_logits(h, aw1_ref[...], ab1_ref[...],
                                   aw2r_ref[...], ab2_ref[...])  # (TN, 1)
        logits = jnp.where(valid, logits, -1e30)
        logit_ref[...] = logits.reshape(1, tile_n, 1)

        # -- online-softmax pooling; big reductions run on the MXU ------------
        t_max = jnp.max(logits, axis=0, keepdims=True)           # (1, 1)
        m_new = jnp.maximum(m_sc[...], t_max)
        corr = jnp.exp(m_sc[...] - m_new)
        p = jnp.exp(logits - m_new)                              # (TN, 1) f32
        ones_row = jnp.ones((1, tile_n), f32)                    # lane-major
        h_pool = h.astype(f32)
        l_sc[...] = corr * l_sc[...] + jnp.dot(
            ones_row, p, preferred_element_type=f32)
        acc_sc[...] = corr * acc_sc[...] + jnp.dot(
            ones_row, p * h_pool, preferred_element_type=f32)
        m_sc[...] = m_new

        # -- emit this core's partial softmax state once -----------------------
        @pl.when(i == pl.num_programs(1) - 1)
        def _flush():
            m_out_ref[...] = m_sc[...].reshape(1, 1, 1)
            l_out_ref[...] = l_sc[...].reshape(1, 1, 1)
            acc_out_ref[...] = acc_sc[...].reshape(1, 1, -1)

    return kernel


def _const_spec(shape):
    """Full-array block, resident across the whole grid."""
    zeros = (0,) * len(shape)
    return pl.BlockSpec(shape, lambda c, i: zeros)


@functools.partial(jax.jit,
                   static_argnames=("tile_n", "use_bf16_act", "num_cores",
                                    "triple_buffer"))
def _forward_impl(x, x_clinical, params, *, tile_n, use_bf16_act, num_cores,
                  triple_buffer):
    f32, bf16 = jnp.float32, jnp.bfloat16
    _, n_inst, in_f = x.shape
    c1 = params["c1w"].shape[1]
    c2 = params["c2w"].shape[1]
    fc1 = params["fcw"].shape[1]
    fc2 = params["aw1"].shape[1]
    act_dt = bf16 if use_bf16_act else f32

    # Stream x straight from the caller's buffer: no pad, no wrapper-side cast.
    x2d = x.reshape(n_inst, in_f)
    if x2d.dtype not in (jnp.float32, jnp.bfloat16):
        x2d = x2d.astype(f32)
    row_align = 16 if x2d.dtype == jnp.bfloat16 else 8
    tn = max(row_align,
             min(_round_up(tile_n, 16), _round_up(n_inst, row_align)))
    num_tiles = _cdiv(n_inst, tn)
    nc = max(1, min(num_cores, num_tiles))       # leading grid axis -> TCs
    t_inner = _cdiv(num_tiles, nc)
    rows_out = nc * t_inner * tn                 # logits rows actually emitted

    c1w = params["c1w"].astype(bf16)
    c2w = params["c2w"].astype(bf16)
    fcw = params["fcw"].astype(bf16)
    aw1 = params["aw1"].astype(bf16) if use_bf16_act else params["aw1"]
    aw2_row = params["aw2"].reshape(1, -1)       # (1, fc2) for the lane reduce

    inputs = [
        x2d,
        c1w, params["c1b"], c2w, params["c2b"], fcw, params["fcb"],
        aw1, params["ab1"], aw2_row, params["ab2"],
        params["alphas"],
    ]

    # Each core's tiles are contiguous; grid steps beyond num_tiles (only when
    # nc * t_inner > num_tiles) re-read the last valid tile and are fully
    # masked in-kernel.
    if nc * t_inner == num_tiles:
        def x_index_map(c, i):
            return (c * t_inner + i, 0)
    else:
        def x_index_map(c, i):
            return (jnp.minimum(c * t_inner + i, num_tiles - 1), 0)

    x_spec_kwargs = {"pipeline_mode": pl.Buffered(3)} if triple_buffer else {}
    in_specs = (
        [pl.BlockSpec((tn, in_f), x_index_map, **x_spec_kwargs)]   # streamed x
        + [_const_spec(a.shape) for a in inputs[1:11]]             # weights
        + [pl.BlockSpec(memory_space=pltpu.MemorySpace.SMEM)]      # PReLU alphas
    )

    out_shape = (
        jax.ShapeDtypeStruct((nc, t_inner * tn, 1), f32),   # raw attention logits
        jax.ShapeDtypeStruct((nc, 1, 1), f32),              # per-core running max
        jax.ShapeDtypeStruct((nc, 1, 1), f32),              # per-core denominator
        jax.ShapeDtypeStruct((nc, 1, fc1), f32),            # per-core weighted sum
    )
    out_specs = (
        pl.BlockSpec((1, tn, 1), lambda c, i: (c, i, 0)),
        pl.BlockSpec((1, 1, 1), lambda c, i: (c, 0, 0)),
        pl.BlockSpec((1, 1, 1), lambda c, i: (c, 0, 0)),
        pl.BlockSpec((1, 1, fc1), lambda c, i: (c, 0, 0)),
    )

    flops = 2 * rows_out * (in_f * c1 + c1 * c2 + c2 * fc1 + fc1 * fc2
                            + fc2 + 2 * fc1)
    transcendentals = rows_out * (fc2 + 2)
    bytes_accessed = (int(x2d.size) * x2d.dtype.itemsize
                      + sum(int(a.size) * a.dtype.itemsize for a in inputs[1:])
                      + rows_out * 4 + nc * (fc1 + 2) * 4)
    cost = pl.CostEstimate(flops=int(flops),
                           transcendentals=int(transcendentals),
                           bytes_accessed=int(bytes_accessed))

    kernel = _make_kernel(tn, n_inst, act_dt)
    vmem_limit = (64 if tn > 2048 else 32) * 1024 * 1024   # v7x: 64 MiB physical

    logits_raw, part_m, part_l, part_acc = pl.pallas_call(
        kernel,
        out_shape=out_shape,
        grid_spec=pltpu.PrefetchScalarGridSpec(
            num_scalar_prefetch=0,
            grid=(nc, t_inner),
            in_specs=in_specs,
            out_specs=out_specs,
            scratch_shapes=[
                pltpu.VMEM((1, 1), f32),      # online-softmax running max
                pltpu.VMEM((1, 1), f32),      # online-softmax denominator
                pltpu.VMEM((1, fc1), f32),    # weighted-sum accumulator
            ],
        ),
        compiler_params=pltpu.CompilerParams(
            dimension_semantics=("parallel", "arbitrary"),
            vmem_limit_bytes=vmem_limit,
        ),
        cost_estimate=cost,
    )(*inputs)

    # ---- tiny N-independent tail in the (jitted) wrapper ---------------------
    # Merge the per-core online-softmax partials (cores whose whole range was
    # masked carry m = -1e30 and acc = 0, so they contribute exactly zero).
    m_c = part_m[:, 0, 0]
    scale = jnp.exp(m_c - jnp.max(m_c))                              # (nc,)
    l_g = jnp.sum(scale * part_l[:, 0, 0])
    x2 = (jnp.sum(scale[:, None] * part_acc[:, 0, :], axis=0, keepdims=True)
          / l_g)                                                     # (1, fc1)

    # Exact softmax over the raw logits for the returned attention map.
    att = jax.nn.softmax(logits_raw.reshape(-1)[:n_inst]).reshape(1, n_inst)

    # Clinical path + classifier + sigmoid (f32, identical to the PyTorch tail).
    y_prob = _tail(x2, x_clinical, params)
    return y_prob, att


def nn_model2aplus_clinical_forward(x, x_clinical, params, *, tile_n=None,
                                    use_bf16_act=None, num_cores=None):
    """x: (1, N, in_features); x_clinical: (1, n_clinical).
    Returns (y_prob (1, fc_output), x_attention (1, N))."""
    kind = jax.devices()[0].device_kind.lower()
    is_v5e = ("v5e" in kind) or ("v5 lite" in kind) or ("v5lite" in kind)
    is_v6 = ("v6" in kind) or ("trillium" in kind)
    is_v7 = "v7" in kind
    if use_bf16_act is None:
        use_bf16_act = bool(is_v6 or is_v7)    # v5e has no bf16 VALU/EUP
    if num_cores is None:
        num_cores = 2 if is_v7 else 1          # v7x: 2 TensorCores per chip
    if tile_n is None:
        tile_n = 4096 if is_v6 else 2048       # v6e: 128 MiB VMEM headroom
    return _forward_impl(x, x_clinical, params,
                         tile_n=int(tile_n),
                         use_bf16_act=bool(use_bf16_act),
                         num_cores=int(num_cores),
                         triple_buffer=bool(is_v5e))


# ---- references & parameters -------------------------------------------------

def reference_forward_mirror(x, x_clinical, p, use_bf16_act):
    """Pure-JAX mirror of the kernel's dtype choices (global softmax pooling).
    Shares _extractor_stage/_attention_logits/_tail with the kernel."""
    act_dt = jnp.bfloat16 if use_bf16_act else jnp.float32
    n_inst, in_f = x.shape[1], x.shape[2]
    al = p["alphas"]
    h = _extractor_stage(x.reshape(n_inst, in_f),
                         p["c1w"].astype(jnp.bfloat16), p["c1b"], al[0], act_dt)
    h = _extractor_stage(h, p["c2w"].astype(jnp.bfloat16), p["c2b"], al[1], act_dt)
    h = _extractor_stage(h, p["fcw"].astype(jnp.bfloat16), p["fcb"], al[2], act_dt)
    aw1 = p["aw1"].astype(jnp.bfloat16) if use_bf16_act else p["aw1"]
    logits = _attention_logits(h, aw1, p["ab1"], p["aw2"].reshape(1, -1), p["ab2"])
    att = jax.nn.softmax(logits[:, 0]).reshape(1, n_inst)
    x2 = att @ h.astype(jnp.float32)
    return _tail(x2, x_clinical, p), att


def reference_forward_f32(x, x_clinical, p):
    """Pure-f32 JAX mirror of the PyTorch forward (eval mode)."""
    n_inst, in_f = x.shape[1], x.shape[2]
    a = p["alphas"]
    h = x.reshape(n_inst, in_f).astype(jnp.float32)
    h = _prelu(h @ p["c1w"] + p["c1b"], a[0])
    h = _prelu(h @ p["c2w"] + p["c2b"], a[1])
    h = _prelu(h @ p["fcw"] + p["fcb"], a[2])
    logits = (jnp.tanh(h @ p["aw1"] + p["ab1"]) @ p["aw2"] + p["ab2"]).T   # (1, N)
    att = jax.nn.softmax(logits, axis=1)
    x2 = att @ h
    return _tail(x2, x_clinical, p), att


def init_params(key, in_features=256, conv1=128, conv2=128,
                fc_1=64, fc_2=32, n_clinical=1, fc_output=1, scale=0.05):
    ks = iter(jax.random.split(key, 32))

    def lin(i, o):
        w = scale * jax.random.normal(next(ks), (i, o), jnp.float32)
        b = scale * jax.random.normal(next(ks), (1, o), jnp.float32)
        return w, b

    p = {}
    p["c1w"], p["c1b"] = lin(in_features, conv1)      # Conv1d(in_features, ., 1)
    p["c2w"], p["c2b"] = lin(conv1, conv2)            # Conv1d(., ., 1)
    p["fcw"], p["fcb"] = lin(conv2, fc_1)             # Linear(., fc_1)
    p["aw1"], p["ab1"] = lin(fc_1, fc_2)              # Attention: Linear(L, D)
    p["aw2"], p["ab2"] = lin(fc_2, 1)                 # Attention: Linear(D, 1)
    p["cw1"], p["cb1"] = lin(n_clinical, 16)          # clinical_path
    p["cw2"], p["cb2"] = lin(16, 32)
    p["k1w"], p["k1b"] = lin(fc_1 + 32, fc_2)         # classifier
    p["k2w"], p["k2b"] = lin(fc_2, fc_2 // 2)
    p["k3w"], p["k3b"] = lin(fc_2 // 2, fc_output)
    # 5 PReLU layers, PyTorch default init 0.25 (conv x2, fc x1, classifier x2)
    p["alphas"] = jnp.full((5,), 0.25, jnp.float32)
    return p


def _close(a, b, rtol, atol, name):
    if not bool(jnp.allclose(a, b, rtol=rtol, atol=atol)):
        err = float(jnp.max(jnp.abs(jnp.asarray(a, jnp.float32)
                                    - jnp.asarray(b, jnp.float32))))
        raise AssertionError(f"{name}: mismatch (max abs err {err:.3e})")


if __name__ == "__main__":
    key = jax.random.PRNGKey(0)
    k_p, k_x, k_c, k_x2 = jax.random.split(key, 4)

    IN_F, N_CLIN = 256, 1
    params = init_params(k_p, in_features=IN_F, conv1=128, conv2=128,
                         fc_1=64, fc_2=32, n_clinical=N_CLIN, fc_output=1)
    x_clin = jax.random.normal(k_c, (1, N_CLIN), jnp.float32)

    def run_case(n, tile, act_bf16, cores, seed):
        xb = jax.random.normal(jax.random.fold_in(k_x, seed),
                               (1, n, IN_F), jnp.float32)
        y, a = jax.block_until_ready(
            nn_model2aplus_clinical_forward(xb, x_clin, params, tile_n=tile,
                                            use_bf16_act=act_bf16,
                                            num_cores=cores))
        assert y.shape == (1, 1) and a.shape == (1, n)
        tag = f"N={n}, tile={tile}, bf16={act_bf16}, cores={cores}"
        y_m, a_m = reference_forward_mirror(xb, x_clin, params, act_bf16)
        rtol = 1e-2 if act_bf16 else 2e-3
        _close(y, y_m, rtol, 1e-5, f"y vs mirror ({tag})")
        _close(a, a_m, rtol, 1e-6, f"att vs mirror ({tag})")
        y_f, _ = reference_forward_f32(xb, x_clin, params)
        _close(y, y_f, 6e-2, 5e-3, f"y vs f32 ({tag})")
        s = float(jnp.sum(a))
        assert abs(s - 1.0) < 1e-4, f"attention does not sum to 1 ({tag}): {s}"

    # 1) tiny bag, single tile, f32 activations
    run_case(8, 2048, False, 1, seed=1)
    # 2) multi-tile ragged stream (cross-tile online softmax), f32 activations
    run_case(300, 128, False, 1, seed=2)
    # 3) bf16 activations + two-core decomposition (v7x layout) + clamped tile
    run_case(300, 128, True, 2, seed=3)

    # 4) device-default configuration (auto act dtype / cores / tile)
    xb = jax.random.normal(k_x2, (1, 300, IN_F), jnp.float32)
    y_auto, a_auto = jax.block_until_ready(
        nn_model2aplus_clinical_forward(xb, x_clin, params))
    assert y_auto.shape == (1, 1) and a_auto.shape == (1, 300)
    y_f, _ = reference_forward_f32(xb, x_clin, params)
    _close(y_auto, y_f, 6e-2, 5e-3, "y (auto config) vs f32")
    assert abs(float(jnp.sum(a_auto)) - 1.0) < 1e-4

    print("KERNEL_OK")
</pallas_src>

<mosaic_0001>
module attributes {stable_mosaic.version = 11 : i64} {
  func.func @kernel(%arg0: i32, %arg1: i32, %arg2: memref<8x256xf32, #tpu.memory_space<vmem>>, %arg3: memref<256x128xbf16, #tpu.memory_space<vmem>>, %arg4: memref<1x128xf32, #tpu.memory_space<vmem>>, %arg5: memref<128x128xbf16, #tpu.memory_space<vmem>>, %arg6: memref<1x128xf32, #tpu.memory_space<vmem>>, %arg7: memref<128x64xbf16, #tpu.memory_space<vmem>>, %arg8: memref<1x64xf32, #tpu.memory_space<vmem>>, %arg9: memref<64x32xf32, #tpu.memory_space<vmem>>, %arg10: memref<1x32xf32, #tpu.memory_space<vmem>>, %arg11: memref<1x32xf32, #tpu.memory_space<vmem>>, %arg12: memref<1x1xf32, #tpu.memory_space<vmem>>, %arg13: memref<5xf32, #tpu.memory_space<smem>>, %arg14: memref<1x8x1xf32, #tpu.memory_space<vmem>>, %arg15: memref<1x1x1xf32, #tpu.memory_space<vmem>>, %arg16: memref<1x1x1xf32, #tpu.memory_space<vmem>>, %arg17: memref<1x1x64xf32, #tpu.memory_space<vmem>>, %arg18: memref<1x1xf32, #tpu.memory_space<vmem>>, %arg19: memref<1x1xf32, #tpu.memory_space<vmem>>, %arg20: memref<1x64xf32, #tpu.memory_space<vmem>>) attributes {dimension_semantics = [#tpu.dimension_semantics<parallel>, #tpu.dimension_semantics<arbitrary>], iteration_bounds = array<i64: 1, 1>, scalar_prefetch = 0 : i64, scratch_operands = 3 : i64, tpu.core_type = #tpu.core_type<tc>, window_params = [{transform_indices = @transform_0, window_bounds = array<i64: 8, 256>}, {pipeline_mode = #tpu.pipeline_mode<synchronous>, transform_indices = @transform_1, window_bounds = array<i64: 256, 128>}, {pipeline_mode = #tpu.pipeline_mode<synchronous>, transform_indices = @transform_2, window_bounds = array<i64: 1, 128>}, {pipeline_mode = #tpu.pipeline_mode<synchronous>, transform_indices = @transform_3, window_bounds = array<i64: 128, 128>}, {pipeline_mode = #tpu.pipeline_mode<synchronous>, transform_indices = @transform_4, window_bounds = array<i64: 1, 128>}, {pipeline_mode = #tpu.pipeline_mode<synchronous>, transform_indices = @transform_5, window_bounds = array<i64: 128, 64>}, {pipeline_mode = #tpu.pipeline_mode<synchronous>, transform_indices = @transform_6, window_bounds = array<i64: 1, 64>}, {pipeline_mode = #tpu.pipeline_mode<synchronous>, transform_indices = @transform_7, window_bounds = array<i64: 64, 32>}, {pipeline_mode = #tpu.pipeline_mode<synchronous>, transform_indices = @transform_8, window_bounds = array<i64: 1, 32>}, {pipeline_mode = #tpu.pipeline_mode<synchronous>, transform_indices = @transform_9, window_bounds = array<i64: 1, 32>}, {pipeline_mode = #tpu.pipeline_mode<synchronous>, transform_indices = @transform_10, window_bounds = array<i64: 1, 1>}, {transform_indices = @transform_11, window_bounds = array<i64: 5>}, {transform_indices = @transform_12, window_bounds = array<i64: 1, 8, 1>}, {transform_indices = @transform_13, window_bounds = array<i64: 1, 1, 1>}, {transform_indices = @transform_14, window_bounds = array<i64: 1, 1, 1>}, {transform_indices = @transform_15, window_bounds = array<i64: 1, 1, 64>}]} {
    %c1_i32 = arith.constant 1 : i32
    %0 = arith.muli %arg0, %c1_i32 : i32
    %1 = arith.addi %0, %arg1 : i32
    %c0_i32 = arith.constant 0 : i32
    %2 = arith.cmpi eq, %arg1, %c0_i32 : i32
    %3 = arith.extui %2 : i1 to i32
    %c0_i32_0 = arith.constant 0 : i32
    %4 = arith.cmpi ne, %3, %c0_i32_0 : i32
    scf.if %4 {
      %cst_56 = arith.constant -1.000000e+30 : f32
      %98 = vector.broadcast %cst_56 : f32 to vector<1x1xf32>
      %c0_57 = arith.constant 0 : index
      %c0_58 = arith.constant 0 : index
      %99 = vector.load %arg18[%c0_57, %c0_58] : memref<1x1xf32, #tpu.memory_space<vmem>>, vector<1x1xf32>
      tpu.vector_store %arg18[%c0_57, %c0_58], %98 {strides = array<i32>} : memref<1x1xf32, #tpu.memory_space<vmem>>, vector<1x1xf32>,
      %cst_59 = arith.constant 0.000000e+00 : f32
      %100 = vector.broadcast %cst_59 : f32 to vector<1x1xf32>
      %c0_60 = arith.constant 0 : index
      %c0_61 = arith.constant 0 : index
      %101 = vector.load %arg19[%c0_60, %c0_61] : memref<1x1xf32, #tpu.memory_space<vmem>>, vector<1x1xf32>
      tpu.vector_store %arg19[%c0_60, %c0_61], %100 {strides = array<i32>} : memref<1x1xf32, #tpu.memory_space<vmem>>, vector<1x1xf32>,
      %cst_62 = arith.constant 0.000000e+00 : f32
      %102 = vector.broadcast %cst_62 : f32 to vector<1x64xf32>
      %c0_63 = arith.constant 0 : index
      %c0_64 = arith.constant 0 : index
      %103 = vector.load %arg20[%c0_63, %c0_64] : memref<1x64xf32, #tpu.memory_space<vmem>>, vector<1x64xf32>
      tpu.vector_store %arg20[%c0_63, %c0_64], %102 {strides = array<i32>} : memref<1x64xf32, #tpu.memory_space<vmem>>, vector<1x64xf32>,
    } else {
    }
    %c0 = arith.constant 0 : index
    %c0_1 = arith.constant 0 : index
    %5 = vector.load %arg2[%c0, %c0_1] : memref<8x256xf32, #tpu.memory_space<vmem>>, vector<8x256xf32>
    %c0_2 = arith.constant 0 : index
    %c0_3 = arith.constant 0 : index
    %6 = vector.load %arg3[%c0_2, %c0_3] : memref<256x128xbf16, #tpu.memory_space<vmem>>, vector<256x128xbf16>
    %c0_4 = arith.constant 0 : index
    %c0_5 = arith.constant 0 : index
    %7 = vector.load %arg4[%c0_4, %c0_5] : memref<1x128xf32, #tpu.memory_space<vmem>>, vector<1x128xf32>
    %c0_6 = arith.constant 0 : index
    %8 = memref.load %arg13[%c0_6] : memref<5xf32, #tpu.memory_space<smem>>
    %9 = arith.truncf %5 : vector<8x256xf32> to vector<8x256xbf16>
    %cst = arith.constant dense<0.000000e+00> : vector<8x128xf32>
    %10 = tpu.matmul %9, %6, %cst {dimension_numbers = #tpu.dot_dimension_numbers<[1], [0], [0], [1], [0, 0, 1, 1], [], []>} : vector<8x256xbf16>, vector<256x128xbf16>, vector<8x128xf32> -> vector<8x128xf32>
    %11 = vector.broadcast %7 : vector<1x128xf32> to vector<8x128xf32>
    %12 = arith.addf %10, %11 : vector<8x128xf32>
    %cst_7 = arith.constant 0.000000e+00 : f32
    %13 = vector.broadcast %cst_7 : f32 to vector<8x128xf32>
    %14 = arith.cmpf ogt, %12, %13 : vector<8x128xf32>
    %15 = vector.broadcast %8 : f32 to vector<8x128xf32>
    %16 = arith.mulf %15, %12 : vector<8x128xf32>
    %17 = arith.select %14, %12, %16 : vector<8x128xi1>, vector<8x128xf32>
    %c0_8 = arith.constant 0 : index
    %c0_9 = arith.constant 0 : index
    %18 = vector.load %arg5[%c0_8, %c0_9] : memref<128x128xbf16, #tpu.memory_space<vmem>>, vector<128x128xbf16>
    %c0_10 = arith.constant 0 : index
    %c0_11 = arith.constant 0 : index
    %19 = vector.load %arg6[%c0_10, %c0_11] : memref<1x128xf32, #tpu.memory_space<vmem>>, vector<1x128xf32>
    %c1 = arith.constant 1 : index
    %20 = memref.load %arg13[%c1] : memref<5xf32, #tpu.memory_space<smem>>
    %21 = arith.truncf %17 : vector<8x128xf32> to vector<8x128xbf16>
    %cst_12 = arith.constant dense<0.000000e+00> : vector<8x128xf32>
    %22 = tpu.matmul %21, %18, %cst_12 {dimension_numbers = #tpu.dot_dimension_numbers<[1], [0], [0], [1], [0, 0, 1, 1], [], []>} : vector<8x128xbf16>, vector<128x128xbf16>, vector<8x128xf32> -> vector<8x128xf32>
    %23 = vector.broadcast %19 : vector<1x128xf32> to vector<8x128xf32>
    %24 = arith.addf %22, %23 : vector<8x128xf32>
    %cst_13 = arith.constant 0.000000e+00 : f32
    %25 = vector.broadcast %cst_13 : f32 to vector<8x128xf32>
    %26 = arith.cmpf ogt, %24, %25 : vector<8x128xf32>
    %27 = vector.broadcast %20 : f32 to vector<8x128xf32>
    %28 = arith.mulf %27, %24 : vector<8x128xf32>
    %29 = arith.select %26, %24, %28 : vector<8x128xi1>, vector<8x128xf32>
    %c0_14 = arith.constant 0 : index
    %c0_15 = arith.constant 0 : index
    %30 = vector.load %arg7[%c0_14, %c0_15] : memref<128x64xbf16, #tpu.memory_space<vmem>>, vector<128x64xbf16>
    %c0_16 = arith.constant 0 : index
    %c0_17 = arith.constant 0 : index
    %31 = vector.load %arg8[%c0_16, %c0_17] : memref<1x64xf32, #tpu.memory_space<vmem>>, vector<1x64xf32>
    %c2 = arith.constant 2 : index
    %32 = memref.load %arg13[%c2] : memref<5xf32, #tpu.memory_space<smem>>
    %33 = arith.truncf %29 : vector<8x128xf32> to vector<8x128xbf16>
    %cst_18 = arith.constant dense<0.000000e+00> : vector<8x64xf32>
    %34 = tpu.matmul %33, %30, %cst_18 {dimension_numbers = #tpu.dot_dimension_numbers<[1], [0], [0], [1], [0, 0, 1, 1], [], []>} : vector<8x128xbf16>, vector<128x64xbf16>, vector<8x64xf32> -> vector<8x64xf32>
    %35 = vector.broadcast %31 : vector<1x64xf32> to vector<8x64xf32>
    %36 = arith.addf %34, %35 : vector<8x64xf32>
    %cst_19 = arith.constant 0.000000e+00 : f32
    %37 = vector.broadcast %cst_19 : f32 to vector<8x64xf32>
    %38 = arith.cmpf ogt, %36, %37 : vector<8x64xf32>
    %39 = vector.broadcast %32 : f32 to vector<8x64xf32>
    %40 = arith.mulf %39, %36 : vector<8x64xf32>
    %41 = arith.select %38, %36, %40 : vector<8x64xi1>, vector<8x64xf32>
    %42 = tpu.iota {dimensions = array<i32: 0>} : vector<8x1xi32>
    %c8_i32 = arith.constant 8 : i32
    %43 = arith.muli %1, %c8_i32 : i32
    %44 = vector.broadcast %43 : i32 to vector<8x1xi32>
    %45 = arith.addi %42, %44 : vector<8x1xi32>
    %c8_i32_20 = arith.constant 8 : i32
    %46 = vector.broadcast %c8_i32_20 : i32 to vector<8x1xi32>
    %47 = arith.cmpi slt, %45, %46 : vector<8x1xi32>
    %cst_21 = arith.constant 0.000000e+00 : f32
    %48 = vector.shape_cast %47 : vector<8x1xi1> to vector<8x1xi1>
    %49 = vector.broadcast %48 : vector<8x1xi1> to vector<8x64xi1>
    %50 = vector.broadcast %cst_21 : f32 to vector<8x64xf32>
    %51 = arith.select %49, %41, %50 : vector<8x64xi1>, vector<8x64xf32>
    %c0_22 = arith.constant 0 : index
    %c0_23 = arith.constant 0 : index
    %52 = vector.load %arg9[%c0_22, %c0_23] : memref<64x32xf32, #tpu.memory_space<vmem>>, vector<64x32xf32>
    %c0_24 = arith.constant 0 : index
    %c0_25 = arith.constant 0 : index
    %53 = vector.load %arg10[%c0_24, %c0_25] : memref<1x32xf32, #tpu.memory_space<vmem>>, vector<1x32xf32>
    %c0_26 = arith.constant 0 : index
    %c0_27 = arith.constant 0 : index
    %54 = vector.load %arg11[%c0_26, %c0_27] : memref<1x32xf32, #tpu.memory_space<vmem>>, vector<1x32xf32>
    %c0_28 = arith.constant 0 : index
    %c0_29 = arith.constant 0 : index
    %55 = vector.load %arg12[%c0_28, %c0_29] : memref<1x1xf32, #tpu.memory_space<vmem>>, vector<1x1xf32>
    %cst_30 = arith.constant dense<0.000000e+00> : vector<8x32xf32>
    %56 = tpu.matmul %51, %52, %cst_30 {dimension_numbers = #tpu.dot_dimension_numbers<[1], [0], [0], [1], [0, 0, 1, 1], [], []>} : vector<8x64xf32>, vector<64x32xf32>, vector<8x32xf32> -> vector<8x32xf32>
    %57 = vector.broadcast %53 : vector<1x32xf32> to vector<8x32xf32>
    %58 = arith.addf %56, %57 : vector<8x32xf32>
    %59 = math.tanh %58 : vector<8x32xf32>
    %60 = vector.broadcast %54 : vector<1x32xf32> to vector<8x32xf32>
    %61 = arith.mulf %59, %60 : vector<8x32xf32>
    %cst_31 = arith.constant dense<0.000000e+00> : vector<8xf32>
    %62 = vector.multi_reduction <add>, %61, %cst_31 [1] : vector<8x32xf32> to vector<8xf32>
    %63 = vector.shape_cast %62 : vector<8xf32> to vector<8x1xf32>
    %64 = vector.broadcast %55 : vector<1x1xf32> to vector<8x1xf32>
    %65 = arith.addf %63, %64 : vector<8x1xf32>
    %cst_32 = arith.constant -1.000000e+30 : f32
    %66 = vector.broadcast %cst_32 : f32 to vector<8x1xf32>
    %67 = arith.select %47, %65, %66 : vector<8x1xi1>, vector<8x1xf32>
    %68 = vector.shape_cast %67 : vector<8x1xf32> to vector<1x8x1xf32>
    %c0_33 = arith.constant 0 : index
    %c0_34 = arith.constant 0 : index
    %c0_35 = arith.constant 0 : index
    %69 = vector.load %arg14[%c0_33, %c0_34, %c0_35] : memref<1x8x1xf32, #tpu.memory_space<vmem>>, vector<1x8x1xf32>
    tpu.vector_store %arg14[%c0_33, %c0_34, %c0_35], %68 {strides = array<i32>} : memref<1x8x1xf32, #tpu.memory_space<vmem>>, vector<1x8x1xf32>,
    %cst_36 = arith.constant dense<0xFF800000> : vector<1xf32>
    %70 = vector.multi_reduction <maximumf>, %67, %cst_36 [0] : vector<8x1xf32> to vector<1xf32>
    %71 = vector.shape_cast %70 : vector<1xf32> to vector<1x1xf32>
    %c0_37 = arith.constant 0 : index
    %c0_38 = arith.constant 0 : index
    %72 = vector.load %arg18[%c0_37, %c0_38] : memref<1x1xf32, #tpu.memory_space<vmem>>, vector<1x1xf32>
    %73 = arith.maximumf %72, %71 : vector<1x1xf32>
    %c0_39 = arith.constant 0 : index
    %c0_40 = arith.constant 0 : index
    %74 = vector.load %arg18[%c0_39, %c0_40] : memref<1x1xf32, #tpu.memory_space<vmem>>, vector<1x1xf32>
    %75 = arith.subf %74, %73 : vector<1x1xf32>
    %76 = math.exp %75 : vector<1x1xf32>
    %77 = vector.broadcast %73 : vector<1x1xf32> to vector<8x1xf32>
    %78 = arith.subf %67, %77 : vector<8x1xf32>
    %79 = math.exp %78 : vector<8x1xf32>
    %cst_41 = arith.constant 1.000000e+00 : f32
    %80 = vector.broadcast %cst_41 : f32 to vector<1x8xf32>
    %c0_42 = arith.constant 0 : index
    %c0_43 = arith.constant 0 : index
    %81 = vector.load %arg19[%c0_42, %c0_43] : memref<1x1xf32, #tpu.memory_space<vmem>>, vector<1x1xf32>
    %82 = arith.mulf %76, %81 : vector<1x1xf32>
    %cst_44 = arith.constant dense<0.000000e+00> : vector<1x1xf32>
    %83 = tpu.matmul %80, %79, %cst_44 {dimension_numbers = #tpu.dot_dimension_numbers<[1], [0], [0], [1], [0, 0, 1, 1], [], []>} : vector<1x8xf32>, vector<8x1xf32>, vector<1x1xf32> -> vector<1x1xf32>
    %84 = arith.addf %82, %83 : vector<1x1xf32>
    %c0_45 = arith.constant 0 : index
    %c0_46 = arith.constant 0 : index
    %85 = vector.load %arg19[%c0_45, %c0_46] : memref<1x1xf32, #tpu.memory_space<vmem>>, vector<1x1xf32>
    tpu.vector_store %arg19[%c0_45, %c0_46], %84 {strides = array<i32>} : memref<1x1xf32, #tpu.memory_space<vmem>>, vector<1x1xf32>,
    %c0_47 = arith.constant 0 : index
    %c0_48 = arith.constant 0 : index
    %86 = vector.load %arg20[%c0_47, %c0_48] : memref<1x64xf32, #tpu.memory_space<vmem>>, vector<1x64xf32>
    %87 = vector.broadcast %76 : vector<1x1xf32> to vector<1x64xf32>
    %88 = arith.mulf %87, %86 : vector<1x64xf32>
    %89 = vector.broadcast %79 : vector<8x1xf32> to vector<8x64xf32>
    %90 = arith.mulf %89, %51 : vector<8x64xf32>
    %cst_49 = arith.constant dense<0.000000e+00> : vector<1x64xf32>
    %91 = tpu.matmul %80, %90, %cst_49 {dimension_numbers = #tpu.dot_dimension_numbers<[1], [0], [0], [1], [0, 0, 1, 1], [], []>} : vector<1x8xf32>, vector<8x64xf32>, vector<1x64xf32> -> vector<1x64xf32>
    %92 = arith.addf %88, %91 : vector<1x64xf32>
    %c0_50 = arith.constant 0 : index
    %c0_51 = arith.constant 0 : index
    %93 = vector.load %arg20[%c0_50, %c0_51] : memref<1x64xf32, #tpu.memory_space<vmem>>, vector<1x64xf32>
    tpu.vector_store %arg20[%c0_50, %c0_51], %92 {strides = array<i32>} : memref<1x64xf32, #tpu.memory_space<vmem>>, vector<1x64xf32>,
    %c0_52 = arith.constant 0 : index
    %c0_53 = arith.constant 0 : index
    %94 = vector.load %arg18[%c0_52, %c0_53] : memref<1x1xf32, #tpu.memory_space<vmem>>, vector<1x1xf32>
    tpu.vector_store %arg18[%c0_52, %c0_53], %73 {strides = array<i32>} : memref<1x1xf32, #tpu.memory_space<vmem>>, vector<1x1xf32>,
    %c0_i32_54 = arith.constant 0 : i32
    %95 = arith.cmpi eq, %arg1, %c0_i32_54 : i32
    %96 = arith.extui %95 : i1 to i32
    %c0_i32_55 = arith.constant 0 : i32
    %97 = arith.cmpi ne, %96, %c0_i32_55 : i32
    scf.if %97 {
      %c0_56 = arith.constant 0 : index
      %c0_57 = arith.constant 0 : index
      %98 = vector.load %arg18[%c0_56, %c0_57] : memref<1x1xf32, #tpu.memory_space<vmem>>, vector<1x1xf32>
      %99 = vector.shape_cast %98 : vector<1x1xf32> to vector<1x1x1xf32>
      %c0_58 = arith.constant 0 : index
      %c0_59 = arith.constant 0 : index
      %c0_60 = arith.constant 0 : index
      %100 = vector.load %arg15[%c0_58, %c0_59, %c0_60] : memref<1x1x1xf32, #tpu.memory_space<vmem>>, vector<1x1x1xf32>
      tpu.vector_store %arg15[%c0_58, %c0_59, %c0_60], %99 {strides = array<i32>} : memref<1x1x1xf32, #tpu.memory_space<vmem>>, vector<1x1x1xf32>,
      %c0_61 = arith.constant 0 : index
      %c0_62 = arith.constant 0 : index
      %101 = vector.load %arg19[%c0_61, %c0_62] : memref<1x1xf32, #tpu.memory_space<vmem>>, vector<1x1xf32>
      %102 = vector.shape_cast %101 : vector<1x1xf32> to vector<1x1x1xf32>
      %c0_63 = arith.constant 0 : index
      %c0_64 = arith.constant 0 : index
      %c0_65 = arith.constant 0 : index
      %103 = vector.load %arg16[%c0_63, %c0_64, %c0_65] : memref<1x1x1xf32, #tpu.memory_space<vmem>>, vector<1x1x1xf32>
      tpu.vector_store %arg16[%c0_63, %c0_64, %c0_65], %102 {strides = array<i32>} : memref<1x1x1xf32, #tpu.memory_space<vmem>>, vector<1x1x1xf32>,
      %c0_66 = arith.constant 0 : index
      %c0_67 = arith.constant 0 : index
      %104 = vector.load %arg20[%c0_66, %c0_67] : memref<1x64xf32, #tpu.memory_space<vmem>>, vector<1x64xf32>
      %105 = vector.shape_cast %104 : vector<1x64xf32> to vector<1x1x64xf32>
      %c0_68 = arith.constant 0 : index
      %c0_69 = arith.constant 0 : index
      %c0_70 = arith.constant 0 : index
      %106 = vector.load %arg17[%c0_68, %c0_69, %c0_70] : memref<1x1x64xf32, #tpu.memory_space<vmem>>, vector<1x1x64xf32>
      tpu.vector_store %arg17[%c0_68, %c0_69, %c0_70], %105 {strides = array<i32>} : memref<1x1x64xf32, #tpu.memory_space<vmem>>, vector<1x1x64xf32>,
    } else {
    }
    return
  }
  func.func @transform_0(%arg0: i32, %arg1: i32) -> (i32, i32) {
    %c1_i32 = arith.constant 1 : i32
    %0 = arith.muli %arg0, %c1_i32 : i32
    %1 = arith.addi %0, %arg1 : i32
    %c0_i32 = arith.constant 0 : i32
    %c0_i32_0 = arith.constant 0 : i32
    return %1, %c0_i32 : i32, i32
  }
  func.func @transform_1(%arg0: i32, %arg1: i32) -> (i32, i32) {
    %c0_i32 = arith.constant 0 : i32
    %c0_i32_0 = arith.constant 0 : i32
    %c0_i32_1 = arith.constant 0 : i32
    return %c0_i32, %c0_i32_0 : i32, i32
  }
  func.func @transform_2(%arg0: i32, %arg1: i32) -> (i32, i32) {
    %c0_i32 = arith.constant 0 : i32
    %c0_i32_0 = arith.constant 0 : i32
    %c0_i32_1 = arith.constant 0 : i32
    return %c0_i32, %c0_i32_0 : i32, i32
  }
  func.func @transform_3(%arg0: i32, %arg1: i32) -> (i32, i32) {
    %c0_i32 = arith.constant 0 : i32
    %c0_i32_0 = arith.constant 0 : i32
    %c0_i32_1 = arith.constant 0 : i32
    return %c0_i32, %c0_i32_0 : i32, i32
  }
  func.func @transform_4(%arg0: i32, %arg1: i32) -> (i32, i32) {
    %c0_i32 = arith.constant 0 : i32
    %c0_i32_0 = arith.constant 0 : i32
    %c0_i32_1 = arith.constant 0 : i32
    return %c0_i32, %c0_i32_0 : i32, i32
  }
  func.func @transform_5(%arg0: i32, %arg1: i32) -> (i32, i32) {
    %c0_i32 = arith.constant 0 : i32
    %c0_i32_0 = arith.constant 0 : i32
    %c0_i32_1 = arith.constant 0 : i32
    return %c0_i32, %c0_i32_0 : i32, i32
  }
  func.func @transform_6(%arg0: i32, %arg1: i32) -> (i32, i32) {
    %c0_i32 = arith.constant 0 : i32
    %c0_i32_0 = arith.constant 0 : i32
    %c0_i32_1 = arith.constant 0 : i32
    return %c0_i32, %c0_i32_0 : i32, i32
  }
  func.func @transform_7(%arg0: i32, %arg1: i32) -> (i32, i32) {
    %c0_i32 = arith.constant 0 : i32
    %c0_i32_0 = arith.constant 0 : i32
    %c0_i32_1 = arith.constant 0 : i32
    return %c0_i32, %c0_i32_0 : i32, i32
  }
  func.func @transform_8(%arg0: i32, %arg1: i32) -> (i32, i32) {
    %c0_i32 = arith.constant 0 : i32
    %c0_i32_0 = arith.constant 0 : i32
    %c0_i32_1 = arith.constant 0 : i32
    return %c0_i32, %c0_i32_0 : i32, i32
  }
  func.func @transform_9(%arg0: i32, %arg1: i32) -> (i32, i32) {
    %c0_i32 = arith.constant 0 : i32
    %c0_i32_0 = arith.constant 0 : i32
    %c0_i32_1 = arith.constant 0 : i32
    return %c0_i32, %c0_i32_0 : i32, i32
  }
  func.func @transform_10(%arg0: i32, %arg1: i32) -> (i32, i32) {
    %c0_i32 = arith.constant 0 : i32
    %c0_i32_0 = arith.constant 0 : i32
    %c0_i32_1 = arith.constant 0 : i32
    return %c0_i32, %c0_i32_0 : i32, i32
  }
  func.func @transform_11(%arg0: i32, %arg1: i32) -> i32 {
    %c0_i32 = arith.constant 0 : i32
    %c0_i32_0 = arith.constant 0 : i32
    return %c0_i32 : i32
  }
  func.func @transform_12(%arg0: i32, %arg1: i32) -> (i32, i32, i32) {
    %c0_i32 = arith.constant 0 : i32
    %c0_i32_0 = arith.constant 0 : i32
    return %arg0, %arg1, %c0_i32 : i32, i32, i32
  }
  func.func @transform_13(%arg0: i32, %arg1: i32) -> (i32, i32, i32) {
    %c0_i32 = arith.constant 0 : i32
    %c0_i32_0 = arith.constant 0 : i32
    %c0_i32_1 = arith.constant 0 : i32
    return %arg0, %c0_i32, %c0_i32_0 : i32, i32, i32
  }
  func.func @transform_14(%arg0: i32, %arg1: i32) -> (i32, i32, i32) {
    %c0_i32 = arith.constant 0 : i32
    %c0_i32_0 = arith.constant 0 : i32
    %c0_i32_1 = arith.constant 0 : i32
    return %arg0, %c0_i32, %c0_i32_0 : i32, i32, i32
  }
  func.func @transform_15(%arg0: i32, %arg1: i32) -> (i32, i32, i32) {
    %c0_i32 = arith.constant 0 : i32
    %c0_i32_0 = arith.constant 0 : i32
    %c0_i32_1 = arith.constant 0 : i32
    return %arg0, %c0_i32, %c0_i32_0 : i32, i32, i32
  }
}

</mosaic_0001>

<bundles_post_ra>
// kernel: _forward_impl.1
= control target key start
LH: loop header
LB: loop body
LE: loop exit
PB: predicated region body
PF: predicated region fallthrough
CT: control target
= control target key end

     0   :  { %s1476_s0 = inlined_call_operand.vmem [shape: f32[8,256], index: 0, kind: input, shape index: {}]   ;;  %s1477_s1 = inlined_call_operand.vmem [shape: bf16[256,128], index: 1, kind: input, shape index: {}]   ;;  %s1478_s2 = inlined_call_operand.vmem [shape: f32[1,128], index: 2, kind: input, shape index: {}]   ;;  %s1479_s3 = inlined_call_operand.vmem [shape: bf16[128,128], index: 3, kind: input, shape index: {}]   ;;  %s1480_s4 = inlined_call_operand.vmem [shape: f32[1,128], index: 4, kind: input, shape index: {}]   ;;  %s1481_s5 = inlined_call_operand.vmem [shape: bf16[128,64], index: 5, kind: input, shape index: {}]   ;;  %s1482_s6 = inlined_call_operand.vmem [shape: f32[1,64], index: 6, kind: input, shape index: {}]   ;;  %s1483_s7 = inlined_call_operand.vmem [shape: f32[64,32], index: 7, kind: input, shape index: {}]   ;;  %s1484_s8 = inlined_call_operand.vmem [shape: f32[1,32], index: 8, kind: input, shape index: {}]   ;;  %s1485_s9 = inlined_call_operand.vmem [shape: f32[1,32], index: 9, kind: input, shape index: {}]   ;;  %s1486_s10 = inlined_call_operand.<no memory space> [shape: f32[1,1], index: 10, kind: input, shape index: {}]   ;;  %s1487_s11 = inlined_call_operand.vmem [shape: f32[5], index: 11, kind: input, shape index: {}]   ;;  %s1488_s12 = inlined_call_operand.vmem [shape: f32[1,8,1], index: 12, kind: output, shape index: {0}]   ;;  %s1489_s13 = inlined_call_operand.hbm [shape: f32[1,1,1], index: 13, kind: output, shape index: {1}]   ;;  %s1490_s14 = inlined_call_operand.hbm [shape: f32[1,1,1], index: 14, kind: output, shape index: {2}]   ;;  %s1491_s15 = inlined_call_operand.vmem [shape: f32[1,1,64], index: 15, kind: output, shape index: {3}]  }
   0x1   :  { %v21_v0 = vstv %s1486_s10 }
   0x2   :  { %22 = vst [vmem:[#allocation5] sm:$0x1] %v21_v0 }
   0x3   :  { %23 = vsyncpa [#allocation8], 0 }
   0x4   :  { %24 = vsyncpa [#allocation7], 0 }
   0x5   :  { %25 = vsyncpa [#allocation11], 0  ;;  %s61_s22 = sshll.u32 %s1487_s11, 4  ;;  %s62_s22 = int_to_ptr.vmem [resolvable:$true] %s61_s22 }
   0x6   :  { %s1102_s23 = scalar_lea.vmem %s62_s22, 16  ;;  %p1107_p1 = scmp.lt.s32.totalorder %s62_s22, %s62_s22 }
   0x7   :  { %p1103_p0 = scmp.ne.s32.totalorder %s62_s22, %s1102_s23  ;;  %p1108_p2 = scmp.lt.s32.totalorder %s1102_s23, %s1102_s23 }
   0x9   :  { %p1109_p3 = por %p1108_p2, %p1107_p1 }
   0xb   :  { %p1110_p4 = pnand %p1109_p3, %p1103_p0 }
   0xd   :  { %1113 = shalt.err (!%p1110_p4)
}
   0xe   :  { %s1164_s24 = smov [#allocation6]  }
   0xf   :  { %64 = dma.vmem_to_smem %s62_s22, 16, %s1164_s24, [#allocation8]  }
  0x10   :  { %1158 = dma.done.wait [#allocation8], 16  }
  0x11   :  { %1159 = vsyncadd [#allocation8], 4294967280 }
  0x12   :  { %68 = sfence }
  0x13   :  { %v1064_v1 = vld [vmem:[%s1477_s1 + $0x40] sm:$0xff]   ;;  %v1165_v3 = vmov 0.0   ;;  %v1066_v4 = vld [vmem:[%s1477_s1 + $0x48] sm:$0xff]   ;;  %v1068_v6 = vld [vmem:[%s1477_s1 + $0x50] sm:$0xff]   ;;  %vm1166_vm0 = vmmov 0   ;;  %s128_s18 = sld [smem:[#allocation6]] }
  0x14   :  { %v1065_v2 = vld [vmem:[%s1477_s1] sm:$0xff]   ;;  %972 = vmatprep.subr.bf16.mxu1 %v1165_v3  ;;  %919 = vmatprep.subr.bf16.mxu0 %v1064_v1  ;;  %v1067_v5 = vld [vmem:[%s1477_s1 + $0x8] sm:$0xff]   ;;  %v1069_v7 = vld [vmem:[%s1477_s1 + $0x10] sm:$0xff]   ;;  %v1167_v52 = vmov 0.0|0.0   ;;  %s893_s30 = sld [smem:[#allocation6 + $0x1]]  ;;  %vm537_vm4 = vcmask 523264  }
  0x15   :  { %920 = vmatpush3.bf16.msra.mxu0 %v1065_v2  ;;  %v1070_v8 = vld [vmem:[%s1477_s1 + $0x58] sm:$0xff]   ;;  %v1072_v10 = vld [vmem:[%s1477_s1 + $0x60] sm:$0xff]   ;;  %v1074_v12 = vld [vmem:[%s1477_s1 + $0x68] sm:$0xff]   ;;  %988 = vmatprep.mubr.msk.bf16.mxu1 %vm1166_vm0, %v1165_v3  ;;  %vm619_vm5 = vcmask 261120   ;;  %vm88_vm6 = vcmask 0   ;;  %vm631_vm7 = vcmask 7168  }
  0x16   :  { %921 = vmatprep.subr.bf16.mxu0 %v1066_v4  ;;  %v1071_v9 = vld [vmem:[%s1477_s1 + $0x18] sm:$0xff]   ;;  %v1073_v11 = vld [vmem:[%s1477_s1 + $0x20] sm:$0xff]   ;;  %v94_v13 = vld [vmem:[%s1476_s0 + $0x8] sm:$0xff]  ;;  %90 = vst.msk [vmem:[#allocation3] sm:$0x1] %vm88_vm6, %v1165_v3  ;;  %vm91_vm8 = vcmask 516096  }
  0x17   :  { %v130_v14 = vpack.c.bf16 %v94_v13, %v94_v13  ;;  %v1080_v15 = vld [vmem:[%s1479_s3] sm:$0xff]   ;;  %v1075_v16 = vld [vmem:[%s1477_s1 + $0x28] sm:$0xff]   ;;  %v1076_v17 = vld [vmem:[%s1477_s1 + $0x70] sm:$0xff]   ;;  %92 = vst.msk [vmem:[#allocation4] sm:$0x1] %vm91_vm8, %v1165_v3  ;;  %vm656_vm9 = vcmask 64512  }
  0x18   :  { %973 = vmatpush3.bf16.msra.mxu1 %v1080_v15  ;;  %v1081_v18 = vld [vmem:[%s1479_s3 + $0x8] sm:$0xff]   ;;  %v1077_v19 = vld [vmem:[%s1477_s1 + $0x30] sm:$0xff]   ;;  %v1078_v20 = vld [vmem:[%s1477_s1 + $0x78] sm:$0xff]   ;;  %s1172_s24 = smov [#allocation10]  }
  0x19   :  { %922 = vmatpush3.bf16.msra.mxu0 %v1067_v5  ;;  %265 = vmatprep.mubr.bf16.mxu0 %v130_v14  ;;  %v1082_v21 = vld [vmem:[%s1479_s3 + $0x10] sm:$0xff]   ;;  %v1079_v22 = vld [vmem:[%s1477_s1 + $0x38] sm:$0xff]   ;;  %v93_v23 = vld [vmem:[%s1476_s0] sm:$0xff]  ;;  %v274_v41 = vstv %s128_s18  ;;  %s851_s10 = sshll.u32 %s1172_s24, 4  ;;  %s852_s10 = int_to_ptr.vmem [resolvable:$true] %s851_s10 }
  0x1a   :  { %923 = vmatprep.subr.bf16.mxu0 %v1068_v6  ;;  %974 = vmatprep.subr.bf16.mxu1 %v1165_v3  ;;  %v1083_v24 = vld [vmem:[%s1479_s3 + $0x18] sm:$0xff]   ;;  %v129_v25 = vpack.c.bf16 %v93_v23, %v93_v23  ;;  %v1084_v26 = vld [vmem:[%s1479_s3 + $0x20] sm:$0xff]   ;;  %v1085_v27 = vld [vmem:[%s1479_s3 + $0x28] sm:$0xff]   ;;  %v391_v61 = vstv %s893_s30 }
  0x1b   :  { %v1086_v28 = vld [vmem:[%s1479_s3 + $0x30] sm:$0xff]   ;;  %v1087_v29 = vld [vmem:[%s1479_s3 + $0x38] sm:$0xff]   ;;  %v1088_v30 = vld [vmem:[%s1481_s5] sm:$0xff]  }
  0x1c   :  { %975 = vmatpush3.bf16.msra.mxu1 %v1081_v18  ;;  %v1089_v31 = vld [vmem:[%s1481_s5 + $0x8] sm:$0xff]   ;;  %v1090_v32 = vld [vmem:[%s1481_s5 + $0x10] sm:$0xff]   ;;  %v1091_v33 = vld [vmem:[%s1481_s5 + $0x18] sm:$0xff]  }
  0x1d   :  { %924 = vmatpush3.bf16.msra.mxu0 %v1069_v7  ;;  %976 = vmatprep.subr.bf16.mxu1 %v1165_v3  ;;  %v1092_v34 = vld [vmem:[%s1481_s5 + $0x20] sm:$0xff]   ;;  %v1093_v35 = vld [vmem:[%s1481_s5 + $0x28] sm:$0xff]   ;;  %v1094_v47 = vld [vmem:[%s1481_s5 + $0x30] sm:$0xff]  }
  0x1e   :  { %925 = vmatprep.subr.bf16.mxu0 %v1070_v8  ;;  %v876_v37 = vld [vmem:[%s1478_s2] ss:$0 sm:$0xff]  ;;  %v1095_v48 = vld [vmem:[%s1481_s5 + $0x38] sm:$0xff]   ;;  %v521_v50 = vld [vmem:[%s1483_s7 + $0x8] sm:$0xff] }
  0x1f   :  { %v520_v49 = vld [vmem:[%s1483_s7] sm:$0xff]  ;;  %v522_v51 = vld [vmem:[%s1483_s7 + $0x10] sm:$0xff]  ;;  %v523_v54 = vld [vmem:[%s1483_s7 + $0x18] sm:$0xff] }
  0x20   :  { %977 = vmatpush3.bf16.msra.mxu1 %v1082_v21  ;;  %v1042_v53 = vpack.c.bf16 %v521_v50, %v520_v49  ;;  %v1045_v55 = vpack.c.bf16 %v523_v54, %v522_v51  ;;  %v524_v56 = vld [vmem:[%s1483_s7 + $0x20] sm:$0xff]  ;;  %v525_v57 = vld [vmem:[%s1483_s7 + $0x28] sm:$0xff]  ;;  %v526_v6 = vld [vmem:[%s1483_s7 + $0x30] sm:$0xff]  ;;  %v1170_v51 = vmov 1.0  }
  0x21   :  { %926 = vmatpush3.bf16.msra.mxu0 %v1071_v9  ;;  %978 = vmatprep.subr.bf16.mxu1 %v1165_v3  ;;  %v1048_v58 = vpack.c.bf16 %v525_v57, %v524_v56  ;;  %v894_v59 = vld [vmem:[%s1480_s4] ss:$0 sm:$0xff]  ;;  %v527_v7 = vld [vmem:[%s1483_s7 + $0x38] sm:$0xff]  ;;  %s903_s4 = sld [smem:[#allocation6 + $0x2]]  ;;  %v654_v54 = vld [vmem:[#allocation3] sm:$0x1] }
  0x22   :  { %927 = vmatprep.subr.bf16.mxu0 %v1072_v10  ;;  %v1051_v8 = vpack.c.bf16 %v527_v7, %v526_v6  ;;  %v904_v9 = vld [vmem:[%s1482_s6] ss:$0 sm:$0xff] }
  0x23   :  { %v913_v18 = vld [vmem:[%s1484_s8] ss:$0 sm:$0xff] }
  0x24   :  { %979 = vmatpush3.bf16.msra.mxu1 %v1083_v24 }
  0x25   :  { %928 = vmatpush3.bf16.msra.mxu0 %v1073_v11  ;;  %980 = vmatprep.subr.bf16.mxu1 %v1165_v3 }
  0x26   :  { %929 = vmatprep.subr.bf16.mxu0 %v1074_v12 }
  0x27   :  { %v508_v11 = vstv %s903_s4 }
  0x28   :  { %981 = vmatpush3.bf16.msra.mxu1 %v1084_v26  ;;  %v1168_v26 = vmov -1e+30  }
  0x29   :  { %930 = vmatpush3.bf16.msra.mxu0 %v1075_v16  ;;  %982 = vmatprep.subr.bf16.mxu1 %v1165_v3  ;;  %89 = vst.msk [vmem:[#allocation2] sm:$0x1] %vm88_vm6, %v1168_v26 }
  0x2a   :  { %931 = vmatprep.subr.bf16.mxu0 %v1076_v17 }
  0x2c   :  { %983 = vmatpush3.bf16.msra.mxu1 %v1085_v27  ;;  %v1169_v27 = vmov 0  }
  0x2d   :  { %932 = vmatpush3.bf16.msra.mxu0 %v1077_v19  ;;  %984 = vmatprep.subr.bf16.mxu1 %v1165_v3 }
  0x2e   :  { %933 = vmatprep.subr.bf16.mxu0 %v1078_v20  ;;  %1063 = vset.pattern.permute.xlu1 %v1169_v27 }
  0x2f   :  { %1062 = vset.pattern.permute.xlu0 %v1169_v27 }
  0x30   :  { %985 = vmatpush3.bf16.msra.mxu1 %v1086_v28  ;;  %v916_v28 = vld [vmem:[#allocation5] ss:$0 sm:$0xff] }
  0x31   :  { %934 = vmatpush3.bf16.msra.mxu0 %v1079_v22  ;;  %986 = vmatprep.subr.bf16.mxu1 %v1165_v3  ;;  %v915_v22 = vld [vmem:[%s1485_s9] ss:$0 sm:$0xff] }
  0x32   :  { %992 = vmatprep.subr.bf16.mxu0 %v1165_v3 }
  0x34   :  { %266 = vmatmul.mubr.bf16.vlgmr.msra.gmra.mrb[0].mxu0 %v129_v25  ;;  %987 = vmatpush3.bf16.msra.mxu1 %v1087_v29 }
  0x35   :  { %1008 = vmatprep.mubr.msk.bf16.mxu0 %vm1166_vm0, %v1165_v3  ;;  %993 = vmatpush3.bf16.msra.mxu0 %v1088_v30 }
  0x36   :  { %994 = vmatprep.subr.bf16.mxu0 %v1165_v3  ;;  %1041 = vmatprep.subr.bf16.mxu1 %v1167_v52 }
  0x39   :  { %995 = vmatpush3.bf16.msra.mxu0 %v1089_v31 }
  0x3a   :  { %996 = vmatprep.subr.bf16.mxu0 %v1165_v3 }
  0x3d   :  { %997 = vmatpush3.bf16.msra.mxu0 %v1090_v32 }
  0x3e   :  { %998 = vmatprep.subr.bf16.mxu0 %v1165_v3 }
  0x41   :  { %999 = vmatpush3.bf16.msra.mxu0 %v1091_v33  ;;  %v646_v33 = vlaneseq }
  0x42   :  { %1000 = vmatprep.subr.bf16.mxu0 %v1165_v3 }
  0x45   :  { %1001 = vmatpush3.bf16.msra.mxu0 %v1092_v34 }
  0x46   :  { %1002 = vmatprep.subr.bf16.mxu0 %v1165_v3 }
  0x49   :  { %1003 = vmatpush3.bf16.msra.mxu0 %v1093_v35 }
  0x4a   :  { %1004 = vmatprep.subr.bf16.mxu0 %v1165_v3 }
  0x4d   :  { %1005 = vmatpush3.bf16.msra.mxu0 %v1094_v47 }
  0x4e   :  { %1006 = vmatprep.subr.bf16.mxu0 %v1165_v3 }
  0x51   :  { %1007 = vmatpush3.bf16.msra.mxu0 %v1095_v48 }
 0x107   :  { %v935_v36 = vpop.f32.mrb[0].mxu0 }
 0x108   :  { %v936_v38 = vpop.f32.mrb[1].mxu0 }
 0x109   :  { %v937_v39 = vadd.f32 %v936_v38, %v935_v36  ;;  %v938_v40 = vpop.f32.mrb[2].mxu0  ;;  %v1431_v36 = vshrl.u32 %v646_v33, 7 }
 0x10a   :  { %v939_v42 = vpop.f32.mrb[3].mxu0 }
 0x10b   :  { %v268_v43 = vadd.f32 %v937_v39, %v876_v37  ;;  %v640_v39 = vld [vmem:[#allocation2] sm:$0x1]  ;;  %v648_v40 = vsub.s32 0, %v1431_v36 }
 0x10d   :  { %v275_v44 = vmul.f32 %v274_v41, %v268_v43  ;;  %vm273_vm1 = vcmp.gt.f32.partialorder %v268_v43, 0.0 }
 0x10f   :  { %v276_v45 = vsel %vm273_vm1, %v268_v43, %v275_v44 }
 0x110   :  { %v295_v46 = vpack.c.bf16 %v276_v45, %v276_v45 }
 0x112   :  { %989 = vmatmul.mubr.bf16.vlgmr.msra.gmra.mrb[0].mxu1 %v295_v46 }
 0x113   :  { %1028 = vmatprep.mubr.msk.f32.mxu1 %vm1166_vm0, %v1165_v3  ;;  %1043 = vmatpush3.bf16.msra.mxu1 %v1042_v53 }
 0x114   :  { %1044 = vmatprep.subr.bf16.mxu1 %v1167_v52 }
 0x117   :  { %1046 = vmatpush3.bf16.msra.mxu1 %v1045_v55 }
 0x118   :  { %1047 = vmatprep.subr.bf16.mxu1 %v1167_v52 }
 0x11b   :  { %1049 = vmatpush3.bf16.msra.mxu1 %v1048_v58 }
 0x11c   :  { %1050 = vmatprep.subr.bf16.mxu1 %v1167_v52 }
 0x11f   :  { %1052 = vmatpush3.bf16.msra.mxu1 %v1051_v8 }
 0x120   :  { %1031 = vmatprep.subr.mxu1 %v1165_v3 }
 0x1e5   :  { %v384_v60 = vpop.f32.mrb[0].mxu1 }
 0x1e6   :  { %v385_v62 = vadd.f32 %v894_v59, %v384_v60  ;;  %v990_v63 = vpop.f32.mrb[1].mxu1 }
 0x1e7   :  { %v387_v0 = vpop.f32.mrb[2].mxu1 }
 0x1e8   :  { %vm390_vm2 = vcmp.gt.f32.partialorder %v385_v62, 0.0  ;;  %v392_v1 = vmul.f32 %v391_v61, %v385_v62  ;;  %v991_v2 = vpop.f32.mrb[3].mxu1 }
 0x1ea   :  { %v393_v4 = vsel %vm390_vm2, %v385_v62, %v392_v1 }
 0x1eb   :  { %v412_v5 = vpack.c.bf16 %v393_v4, %v393_v4 }
 0x1ed   :  { %1009 = vmatmul.mubr.bf16.vlgmr.msra.gmra.mrb[4].mxu0 %v412_v5 }
 0x2c0   :  { %v501_v10 = vpop.f32.mrb[4].mxu0 }
 0x2c1   :  { %v502_v12 = vadd.f32 %v904_v9, %v501_v10  ;;  %v1010_v13 = vpop.f32.mrb[5].mxu0 }
 0x2c2   :  { %v504_v14 = vpop.f32.mrb[6].mxu0 }
 0x2c3   :  { %vm507_vm3 = vcmp.gt.f32.partialorder %v502_v12, 0.0  ;;  %v509_v15 = vmul.f32 %v508_v11, %v502_v12  ;;  %v1011_v16 = vpop.f32.mrb[7].mxu0 }
 0x2c5   :  { %v510_v17 = vsel %vm507_vm3, %v502_v12, %v509_v15 }
 0x2c6   :  { %1029 = vmatmul.mubr.msk.f32.vlgmr.msra.gmra.mrb[4].mxu1 %vm537_vm4, %v510_v17 }
 0x2c7   :  { %1033 = vmatprep.mubr.msk.f32.mxu1 %vm1166_vm0, %v1165_v3 }
 0x399   :  { %v607_v19 = vpop.f32.mrb[4].mxu1 }
 0x39a   :  { %v608_v20 = vadd.f32 %v913_v18, %v607_v19  ;;  %v1030_v21 = vpop.f32.mrb[5].mxu1 }
 0x39c   :  { %1096 = vtanh.f32 %v608_v20 }
 0x3a6   :  { %v1097_v23 = vpop.eup %1096 }
 0x3a7   :  { %v618_v24 = vmul.f32 %v1097_v23, %v915_v22 }
 0x3a9   :  { %v620_v25 = vsel %vm619_vm5, %v618_v24, 0.0 }
 0x3aa   :  { %621 = vadd.xlane.f32.xlu0 %v620_v25 }
 0x437   :  { %v622_v29 = vpop.xlane.xlu0 %621 }
 0x438   :  { %v629_v30 = vadd.f32 %v916_v28, %v622_v29 }
 0x43a   :  { %632 = vst.msk [vmem:[%s1488_s12] sm:$0xff] %vm631_vm7, %v629_v30  ;;  %v633_v31 = vsel %vm631_vm7, %v629_v30, -inf  ;;  %s1171_s12 = smov [#allocation9]  }
 0x43b   :  { %v634_v32 = vrot.slane %v633_v31, 4  ;;  %s841_s23 = sshll.u32 %s1171_s12, 4  ;;  %s842_s23 = int_to_ptr.vmem [resolvable:$true] %s841_s23 }
 0x43c   :  { %s1114_s25 = scalar_lea.vmem %s842_s23, 16  ;;  %s1118_s26 = scalar_lea.vmem %s842_s23, 32 }
 0x43d   :  { %v635_v34 = vmax.f32 %v633_v31, %v634_v32  ;;  %p1115_p5 = scmp.ne.s32.totalorder %s842_s23, %s1114_s25  ;;  %p1119_p6 = scmp.lt.s32.totalorder %s842_s23, %s842_s23 }
 0x43e   :  { %p1120_p7 = scmp.lt.s32.totalorder %s1118_s26, %s1114_s25 }
 0x43f   :  { %v636_v35 = vrot.slane %v635_v34, 2 }
 0x440   :  { %p1121_p8 = por %p1120_p7, %p1119_p6 }
 0x441   :  { %v637_v37 = vmax.f32 %v635_v34, %v636_v35 }
 0x442   :  { %p1122_p9 = pnand %p1121_p8, %p1115_p5 }
 0x443   :  { %v638_v38 = vrot.slane %v637_v37, 1 }
 0x445   :  { %v639_v41 = vmax.f32 %v637_v37, %v638_v38 }
 0x447   :  { %v641_v42 = vmax.f32 %v640_v39, %v639_v41 }
 0x449   :  { %v649_v43 = vrot.slane %v641_v42, %v648_v40  ;;  %823 = vst.msk [vmem:[#allocation2] sm:$0x1] %vm88_vm6, %v641_v42  ;;  %v642_v44 = vsub.f32 %v640_v39, %v641_v42 }
 0x44b   :  { %v651_v45 = vsub.f32 %v629_v30, %v649_v43  ;;  %v643_v46 = vmul.f32 1.442695, %v642_v44 }
 0x44d   :  { %v652_v47 = vmul.f32 1.442695, %v651_v45  ;;  %1098 = vpow2.f32 %v643_v46 }
 0x44f   :  { %1100 = vpow2.f32 %v652_v47 }
 0x450   :  { %v827_v48 = vld [vmem:[#allocation2] sm:$0x1] }
 0x451   :  { %828 = vst.msk [vmem:[#allocation9] sm:$0x1] %vm88_vm6, %v827_v48 }
 0x457   :  { %v1099_v49 = vpop.eup %1098 }
 0x458   :  { %736 = vperm.xlu1 %1063, %v1099_v49   ;;  %v655_v55 = vmul.f32 %v1099_v49, %v654_v54 }
 0x459   :  { %v1101_v50 = vpop.eup %1100 }
 0x45a   :  { %746 = vperm.xlu0 %1062, %v1101_v50   ;;  %1032 = vmatpush3.msra.mxu1 %v1101_v50 }
 0x45b   :  { %1034 = vmatmul.mubr.msk.f32.vlgmr.msra.gmra.mrb[6].mxu1 %vm656_vm9, %v1170_v51  ;;  %1036 = vmatprep.subr.mxu1 %v1165_v3 }
 0x45c   :  { %1038 = vmatprep.mubr.msk.f32.mxu1 %vm1166_vm0, %v1165_v3 }
 0x4d9   :  { %v747_v52 = vpop.permute.xlu0 %746 }
 0x4da   :  { %v749_v53 = vmul.f32 %v747_v52, %v510_v17 }
 0x4dc   :  { %1037 = vmatpush3.msra.mxu1 %v749_v53 }
 0x4dd   :  { %1039 = vmatmul.mubr.msk.f32.vlgmr.msra.gmra.mrb[8].mxu1 %vm656_vm9, %v1170_v51 }
 0x52e   :  { %v726_v56 = vpop.f32.mrb[6].mxu1 }
 0x52f   :  { %v730_v57 = vadd.f32 %v726_v56, %v655_v55  ;;  %v1035_v58 = vpop.f32.mrb[7].mxu1 }
 0x531   :  { %732 = vst.msk [vmem:[#allocation3] sm:$0x1] %vm88_vm6, %v730_v57 }
 0x538   :  { %v829_v59 = vld [vmem:[#allocation3] sm:$0x1] }
 0x539   :  { %830 = vst.msk [vmem:[#allocation10] sm:$0x1] %vm88_vm6, %v829_v59 }
 0x53a   :  { %1125 = shalt.err (!%p1122_p9)
}
 0x53b   :  { %s1126_s5 = scalar_lea.hbm %s1489_s13, 16 }
 0x53c   :  { %p1127_p10 = scmp.ne.s32.totalorder %s1489_s13, %s1126_s5  ;;  %p1130_p11 = scmp.lt.u32.totalorder %s1126_s5, %s1489_s13 }
 0x53e   :  { %p1132_p12 = pnand %p1130_p11, %p1127_p10 }
 0x540   :  { %1135 = shalt.err (!%p1132_p12)
}
 0x541   :  { %844 = dma.vmem_to_hbm [thread:$0]  %s842_s23, 16, %s1489_s13, [#allocation7]  }
 0x542   :  { %s1136_s18 = scalar_lea.vmem %s852_s10, 16  ;;  %s1140_s1 = scalar_lea.vmem %s852_s10, 32 }
 0x543   :  { %p1137_p13 = scmp.ne.s32.totalorder %s852_s10, %s1136_s18  ;;  %p1141_p0 = scmp.lt.s32.totalorder %s852_s10, %s852_s10 }
 0x544   :  { %p1142_p1 = scmp.lt.s32.totalorder %s1140_s1, %s1136_s18 }
 0x546   :  { %p1143_p2 = por %p1142_p1, %p1141_p0 }
 0x548   :  { %p1144_p3 = pnand %p1143_p2, %p1137_p13 }
 0x54a   :  { %1147 = shalt.err (!%p1144_p3)
}
 0x54b   :  { %s1148_s4 = scalar_lea.hbm %s1490_s14, 16 }
 0x54c   :  { %p1149_p4 = scmp.ne.s32.totalorder %s1490_s14, %s1148_s4  ;;  %p1152_p5 = scmp.lt.u32.totalorder %s1148_s4, %s1490_s14 }
 0x54e   :  { %p1154_p6 = pnand %p1152_p5, %p1149_p4 }
 0x550   :  { %1157 = shalt.err (!%p1154_p6)
}
 0x551   :  { %854 = dma.vmem_to_hbm [thread:$0]  %s852_s10, 16, %s1490_s14, [#allocation11]   ;;  %v737_v3 = vpop.permute.xlu1 %736  ;;  %v733_v61 = vld [vmem:[#allocation4] sm:$0x1] }
 0x552   :  { %v742_v60 = vrot.slane %v737_v3, %v648_v40 }
 0x554   :  { %v743_v62 = vmul.f32 %v742_v60, %v733_v61 }
 0x5b0   :  { %v816_v63 = vpop.f32.mrb[8].mxu1 }
 0x5b1   :  { %v820_v0 = vadd.f32 %v816_v63, %v743_v62  ;;  %v1040_v1 = vpop.f32.mrb[9].mxu1 }
 0x5b3   :  { %822 = vst.msk [vmem:[#allocation4] sm:$0x1] %vm91_vm8, %v820_v0 }
 0x5ba   :  { %v831_v2 = vld [vmem:[#allocation4] sm:$0x1] }
 0x5bb   :  { %832 = vst.msk [vmem:[%s1491_s15] sm:$0x1] %vm91_vm8, %v831_v2 }
 0x5bc   :  { %1160 = dma.done.wait [#allocation7], 16  }
 0x5bd   :  { %1161 = vsyncadd [#allocation7], 4294967280 }
 0x5be   :  { %1162 = dma.done.wait [#allocation11], 16  }
 0x5bf   :  { %1163 = vsyncadd [#allocation11], 4294967280 }
 0x5c0   :  { %867 = vsyncpa [#allocation7], 1 }
 0x5c1   :  { %868 = vsyncpa [#allocation11], 1 }
 0x5c2   :  { %869 = vsyncpa [#allocation8], 1 }

</bundles_post_ra>
